<compile_context>
chip_gen: v7x
topology: tpu7x:2x2x1
jax: 0.10.0
libtpu: 0.0.40
codegen_flags: <defaults>
</compile_context>

<pallas_src>
import functools

import jax
import jax.numpy as jnp
import numpy as np
from jax.experimental import pallas as pl
from jax.experimental.pallas import tpu as pltpu

NEG_SLOPE = 0.2  # LeakyReLU negative_slope


def _leaky_relu(x):
    # Valid for 0 < slope < 1: max(x, slope*x) == LeakyReLU(x).
    return jnp.maximum(x, NEG_SLOPE * x)


def residual_stack_kernel(x_ref, w1f_ref, b1_ref, w12_ref, b12_ref, o_ref,
                          op1_ref, op2_ref, *, t_len, compute_dtype):
    """x_ref/o_ref: (C, L) with L = B * t_len (batch packed along lanes).

    op1_ref: (3C, L) VMEM scratch for the fused k=3 conv operand.
    op2_ref: (2C, L) VMEM scratch for the fused 1x1+skip operand.
    """
    x = x_ref[...]                                   # (C, L) f32
    C, L = x.shape

    # ---- stack branch -------------------------------------------------------
    h = _leaky_relu(x)

    # Time shifts via XLU rotations (circular over the packed lane axis).
    h_m1 = pltpu.roll(h, 1, 1)        # h_m1[:, i] = h[:, i-1 (mod L)]
    h_p1 = pltpu.roll(h, L - 1, 1)    # h_p1[:, i] = h[:, i+1 (mod L)]

    # Per-packed-batch-element ReflectionPad1d(1) edge fix, using a single
    # (1, L) iota row broadcast over sublanes:
    #   left[:, t]  = h[:, t-1]   except left[:, 0]     = h[:, 1]
    #   right[:, t] = h[:, t+1]   except right[:, T-1]  = h[:, T-2]
    col = jax.lax.broadcasted_iota(jnp.int32, (1, L), 1) % t_len
    left = jnp.where(col == 0, h_p1, h_m1)
    right = jnp.where(col == t_len - 1, h_m1, h_p1)

    # Stage the k=3 conv operand into VMEM scratch (avoids concat temporaries):
    # rows [0:C]=k0 tap (t-1), [C:2C]=k1 tap (t), [2C:3C]=k2 tap (t+1).
    op1_ref[pl.ds(0, C), :] = left.astype(compute_dtype)
    op1_ref[pl.ds(C, C), :] = h.astype(compute_dtype)
    op1_ref[pl.ds(2 * C, C), :] = right.astype(compute_dtype)

    # Dilated conv (k=3, d=1): single contraction-3C MXU matmul, f32 accumulate.
    y1 = (jnp.dot(w1f_ref[...], op1_ref[...],
                  preferred_element_type=jnp.float32)
          + b1_ref[...])                                                    # (C, L)

    h2 = _leaky_relu(y1)

    # Fused 1x1 convs: [w2 | ws] @ [h2 ; x] + (b2 + bs) == stack_out + skip.
    op2_ref[pl.ds(0, C), :] = h2.astype(compute_dtype)
    op2_ref[pl.ds(C, C), :] = x.astype(compute_dtype)

    out = (jnp.dot(w12_ref[...], op2_ref[...],
                   preferred_element_type=jnp.float32)
           + b12_ref[...])                                                  # (C, L)

    o_ref[...] = out.astype(o_ref.dtype)


def residual_stack(x, w1, b1, w2, b2, ws, bs, *, use_bf16_matmul=False):
    """x: (B, C, T) f32; w1: (C_out, C_in, 3) torch OIW layout; w2/ws: (C, C); b*: (C,)."""
    B, C, T = x.shape
    K = w1.shape[-1]
    assert K == 3 and T >= 2

    # Pack ALL batch elements along the lane axis: one fat grid step, L = B*T.
    L = B * T
    xp = jnp.transpose(x, (1, 0, 2)).reshape(C, L)

    # bf16 operands speed up the MXU on v6e/v7x at large C; elementwise math
    # stays f32 (important on v5e which has no bf16 VPU/EUP). Off by default
    # to hold the 1e-4 test tolerance.
    compute_dtype = jnp.bfloat16 if use_bf16_matmul else jnp.float32

    # Fused k=3 conv weight: W1f[o, k*C + i] = w1[o, i, k]  -> one (C, 3C) matmul.
    w1f = jnp.transpose(w1, (0, 2, 1)).reshape(C, K * C).astype(compute_dtype)
    # Fused 1x1 weight [w2 | ws] -> (C, 2C); biases pre-summed.
    w12 = jnp.concatenate([w2, ws], axis=1).astype(compute_dtype)
    b1c = b1.reshape(C, 1).astype(jnp.float32)
    b12c = (b2 + bs).reshape(C, 1).astype(jnp.float32)

    kernel = functools.partial(residual_stack_kernel, t_len=T,
                               compute_dtype=compute_dtype)

    out = pl.pallas_call(
        kernel,
        out_shape=jax.ShapeDtypeStruct((C, L), x.dtype),
        grid_spec=pltpu.PrefetchScalarGridSpec(
            num_scalar_prefetch=0,
            grid=(1,),
            in_specs=[
                pl.BlockSpec((C, L), lambda i: (0, 0)),        # packed input slab
                pl.BlockSpec((C, K * C), lambda i: (0, 0)),    # fused k=3 conv weight
                pl.BlockSpec((C, 1), lambda i: (0, 0)),        # conv bias
                pl.BlockSpec((C, 2 * C), lambda i: (0, 0)),    # fused 1x1 weights
                pl.BlockSpec((C, 1), lambda i: (0, 0)),        # fused 1x1 bias
            ],
            out_specs=pl.BlockSpec((C, L), lambda i: (0, 0)),
            scratch_shapes=[
                pltpu.VMEM((3 * C, L), compute_dtype),         # k=3 conv operand
                pltpu.VMEM((2 * C, L), compute_dtype),         # 1x1+skip operand
            ],
        ),
        compiler_params=pltpu.CompilerParams(
            dimension_semantics=("arbitrary",),
            vmem_limit_bytes=32 * 1024 * 1024,
        ),
    )(xp, w1f, b1c, w12, b12c)

    # TODO(synk): in the full MelGAN generator, produce/consume the packed
    # (C, B*T) layout directly (or fuse the dilation 1/3/9 residual blocks into
    # one pallas_call) to eliminate these host-side transposes.
    return jnp.transpose(out.reshape(C, B, T), (1, 0, 2))


def reference_forward(x, w1, b1, w2, b2, ws, bs):
    """Pure-JAX reference matching torch semantics (NCW / OIW)."""
    h = jnp.where(x >= 0, x, NEG_SLOPE * x)
    hp = jnp.concatenate([h[:, :, 1:2], h, h[:, :, -2:-1]], axis=2)  # ReflectionPad1d(1)
    y1 = jax.lax.conv_general_dilated(
        hp, w1, window_strides=(1,), padding='VALID',
        dimension_numbers=('NCH', 'OIH', 'NCH')) + b1[None, :, None]
    h2 = jnp.where(y1 >= 0, y1, NEG_SLOPE * y1)
    y2 = jnp.einsum('oi,bit->bot', w2, h2) + b2[None, :, None]
    skip = jnp.einsum('oi,bit->bot', ws, x) + bs[None, :, None]
    return y2 + skip


if __name__ == "__main__":
    B, C, T, K = 4, 32, 64, 3  # channels=32, kernel_size=3 (module defaults)
    key = jax.random.PRNGKey(0)
    kx, k1, kb1, k2, kb2, k3, kb3 = jax.random.split(key, 7)

    x = jax.random.normal(kx, (B, C, T), dtype=jnp.float32)

    # Deterministic parameter init (torch-like uniform, scale 1/sqrt(fan_in)).
    s3 = 1.0 / np.sqrt(C * K)
    s1 = 1.0 / np.sqrt(C)
    w1 = jax.random.uniform(k1, (C, C, K), jnp.float32, -s3, s3)   # dilated conv (O, I, K)
    b1 = jax.random.uniform(kb1, (C,), jnp.float32, -s3, s3)
    w2 = jax.random.uniform(k2, (C, C), jnp.float32, -s1, s1)      # 1x1 conv in stack
    b2 = jax.random.uniform(kb2, (C,), jnp.float32, -s1, s1)
    ws = jax.random.uniform(k3, (C, C), jnp.float32, -s1, s1)      # skip 1x1 conv
    bs = jax.random.uniform(kb3, (C,), jnp.float32, -s1, s1)

    out = residual_stack(x, w1, b1, w2, b2, ws, bs)
    out = jax.block_until_ready(out)

    ref = reference_forward(x, w1, b1, w2, b2, ws, bs)
    np.testing.assert_allclose(np.asarray(out), np.asarray(ref), atol=1e-4, rtol=1e-4)

    print("KERNEL_OK")
</pallas_src>

<mosaic_0001>
module attributes {stable_mosaic.version = 11 : i64} {
  func.func @residual_stack_kernel(%arg0: i32, %arg1: memref<32x256xf32, #tpu.memory_space<vmem>>, %arg2: memref<32x96xf32, #tpu.memory_space<vmem>>, %arg3: memref<32x1xf32, #tpu.memory_space<vmem>>, %arg4: memref<32x64xf32, #tpu.memory_space<vmem>>, %arg5: memref<32x1xf32, #tpu.memory_space<vmem>>, %arg6: memref<32x256xf32, #tpu.memory_space<vmem>>, %arg7: memref<96x256xf32, #tpu.memory_space<vmem>>, %arg8: memref<64x256xf32, #tpu.memory_space<vmem>>) attributes {dimension_semantics = [#tpu.dimension_semantics<arbitrary>], iteration_bounds = array<i64: 1>, scalar_prefetch = 0 : i64, scratch_operands = 2 : i64, tpu.core_type = #tpu.core_type<tc>, window_params = [{pipeline_mode = #tpu.pipeline_mode<synchronous>, transform_indices = @transform_0, window_bounds = array<i64: 32, 256>}, {pipeline_mode = #tpu.pipeline_mode<synchronous>, transform_indices = @transform_1, window_bounds = array<i64: 32, 96>}, {pipeline_mode = #tpu.pipeline_mode<synchronous>, transform_indices = @transform_2, window_bounds = array<i64: 32, 1>}, {pipeline_mode = #tpu.pipeline_mode<synchronous>, transform_indices = @transform_3, window_bounds = array<i64: 32, 64>}, {pipeline_mode = #tpu.pipeline_mode<synchronous>, transform_indices = @transform_4, window_bounds = array<i64: 32, 1>}, {pipeline_mode = #tpu.pipeline_mode<synchronous>, transform_indices = @transform_5, window_bounds = array<i64: 32, 256>}]} {
    %c0 = arith.constant 0 : index
    %c0_0 = arith.constant 0 : index
    %0 = vector.load %arg1[%c0, %c0_0] : memref<32x256xf32, #tpu.memory_space<vmem>>, vector<32x256xf32>
    %cst = arith.constant 2.000000e-01 : f32
    %1 = vector.broadcast %cst : f32 to vector<32x256xf32>
    %2 = arith.mulf %1, %0 : vector<32x256xf32>
    %3 = arith.maximumf %0, %2 : vector<32x256xf32>
    %c1_i32 = arith.constant 1 : i32
    %4 = tpu.dynamic_rotate %3 by %c1_i32 dim 1 : vector<32x256xf32>, i32 -> vector<32x256xf32>
    %c255_i32 = arith.constant 255 : i32
    %5 = tpu.dynamic_rotate %3 by %c255_i32 dim 1 : vector<32x256xf32>, i32 -> vector<32x256xf32>
    %6 = tpu.iota {dimensions = array<i32: 1>} : vector<1x256xi32>
    %c64_i32 = arith.constant 64 : i32
    %c0_i32 = arith.constant 0 : i32
    %7 = arith.cmpi eq, %c64_i32, %c0_i32 : i32
    %c1_i32_1 = arith.constant 1 : i32
    %8 = arith.select %7, %c1_i32_1, %c64_i32 : i32
    %9 = vector.broadcast %8 : i32 to vector<1x256xi32>
    %10 = arith.remsi %6, %9 : vector<1x256xi32>
    %c0_i32_2 = arith.constant 0 : i32
    %11 = vector.broadcast %c0_i32_2 : i32 to vector<1x256xi32>
    %12 = arith.cmpi ne, %10, %11 : vector<1x256xi32>
    %c0_i32_3 = arith.constant 0 : i32
    %13 = vector.broadcast %c0_i32_3 : i32 to vector<1x256xi32>
    %14 = arith.cmpi slt, %10, %13 : vector<1x256xi32>
    %c0_i32_4 = arith.constant 0 : i32
    %15 = arith.cmpi slt, %8, %c0_i32_4 : i32
    %16 = vector.broadcast %15 : i1 to vector<1x256xi1>
    %17 = vector.broadcast %16 : vector<1x256xi1> to vector<1x256xi1>
    %18 = arith.xori %14, %17 : vector<1x256xi1>
    %19 = arith.andi %18, %12 : vector<1x256xi1>
    %20 = vector.broadcast %8 : i32 to vector<1x256xi32>
    %21 = arith.addi %10, %20 : vector<1x256xi32>
    %22 = arith.select %19, %21, %10 : vector<1x256xi1>, vector<1x256xi32>
    %c0_i32_5 = arith.constant 0 : i32
    %23 = vector.broadcast %c0_i32_5 : i32 to vector<1x256xi32>
    %24 = arith.cmpi eq, %22, %23 : vector<1x256xi32>
    %25 = vector.shape_cast %24 : vector<1x256xi1> to vector<1x256xi1>
    %26 = vector.broadcast %25 : vector<1x256xi1> to vector<32x256xi1>
    %27 = arith.select %26, %5, %4 : vector<32x256xi1>, vector<32x256xf32>
    %c63_i32 = arith.constant 63 : i32
    %28 = vector.broadcast %c63_i32 : i32 to vector<1x256xi32>
    %29 = arith.cmpi eq, %22, %28 : vector<1x256xi32>
    %30 = vector.shape_cast %29 : vector<1x256xi1> to vector<1x256xi1>
    %31 = vector.broadcast %30 : vector<1x256xi1> to vector<32x256xi1>
    %32 = arith.select %31, %4, %5 : vector<32x256xi1>, vector<32x256xf32>
    %c0_6 = arith.constant 0 : index
    %c0_7 = arith.constant 0 : index
    %33 = vector.load %arg7[%c0_6, %c0_7] : memref<96x256xf32, #tpu.memory_space<vmem>>, vector<32x256xf32>
    tpu.vector_store %arg7[%c0_6, %c0_7], %27 {strides = array<i32>} : memref<96x256xf32, #tpu.memory_space<vmem>>, vector<32x256xf32>,
    %c32 = arith.constant 32 : index
    %c0_8 = arith.constant 0 : index
    %34 = vector.load %arg7[%c32, %c0_8] : memref<96x256xf32, #tpu.memory_space<vmem>>, vector<32x256xf32>
    tpu.vector_store %arg7[%c32, %c0_8], %3 {strides = array<i32>} : memref<96x256xf32, #tpu.memory_space<vmem>>, vector<32x256xf32>,
    %c64 = arith.constant 64 : index
    %c0_9 = arith.constant 0 : index
    %35 = vector.load %arg7[%c64, %c0_9] : memref<96x256xf32, #tpu.memory_space<vmem>>, vector<32x256xf32>
    tpu.vector_store %arg7[%c64, %c0_9], %32 {strides = array<i32>} : memref<96x256xf32, #tpu.memory_space<vmem>>, vector<32x256xf32>,
    %c0_10 = arith.constant 0 : index
    %c0_11 = arith.constant 0 : index
    %36 = vector.load %arg2[%c0_10, %c0_11] : memref<32x96xf32, #tpu.memory_space<vmem>>, vector<32x96xf32>
    %c0_12 = arith.constant 0 : index
    %c0_13 = arith.constant 0 : index
    %37 = vector.load %arg7[%c0_12, %c0_13] : memref<96x256xf32, #tpu.memory_space<vmem>>, vector<96x256xf32>
    %cst_14 = arith.constant dense<0.000000e+00> : vector<32x256xf32>
    %38 = tpu.matmul %36, %37, %cst_14 {dimension_numbers = #tpu.dot_dimension_numbers<[1], [0], [0], [1], [0, 0, 1, 1], [], []>} : vector<32x96xf32>, vector<96x256xf32>, vector<32x256xf32> -> vector<32x256xf32>
    %c0_15 = arith.constant 0 : index
    %c0_16 = arith.constant 0 : index
    %39 = vector.load %arg3[%c0_15, %c0_16] : memref<32x1xf32, #tpu.memory_space<vmem>>, vector<32x1xf32>
    %40 = vector.broadcast %39 : vector<32x1xf32> to vector<32x256xf32>
    %41 = arith.addf %38, %40 : vector<32x256xf32>
    %cst_17 = arith.constant 2.000000e-01 : f32
    %42 = vector.broadcast %cst_17 : f32 to vector<32x256xf32>
    %43 = arith.mulf %42, %41 : vector<32x256xf32>
    %44 = arith.maximumf %41, %43 : vector<32x256xf32>
    %c0_18 = arith.constant 0 : index
    %c0_19 = arith.constant 0 : index
    %45 = vector.load %arg8[%c0_18, %c0_19] : memref<64x256xf32, #tpu.memory_space<vmem>>, vector<32x256xf32>
    tpu.vector_store %arg8[%c0_18, %c0_19], %44 {strides = array<i32>} : memref<64x256xf32, #tpu.memory_space<vmem>>, vector<32x256xf32>,
    %c32_20 = arith.constant 32 : index
    %c0_21 = arith.constant 0 : index
    %46 = vector.load %arg8[%c32_20, %c0_21] : memref<64x256xf32, #tpu.memory_space<vmem>>, vector<32x256xf32>
    tpu.vector_store %arg8[%c32_20, %c0_21], %0 {strides = array<i32>} : memref<64x256xf32, #tpu.memory_space<vmem>>, vector<32x256xf32>,
    %c0_22 = arith.constant 0 : index
    %c0_23 = arith.constant 0 : index
    %47 = vector.load %arg4[%c0_22, %c0_23] : memref<32x64xf32, #tpu.memory_space<vmem>>, vector<32x64xf32>
    %c0_24 = arith.constant 0 : index
    %c0_25 = arith.constant 0 : index
    %48 = vector.load %arg8[%c0_24, %c0_25] : memref<64x256xf32, #tpu.memory_space<vmem>>, vector<64x256xf32>
    %cst_26 = arith.constant dense<0.000000e+00> : vector<32x256xf32>
    %49 = tpu.matmul %47, %48, %cst_26 {dimension_numbers = #tpu.dot_dimension_numbers<[1], [0], [0], [1], [0, 0, 1, 1], [], []>} : vector<32x64xf32>, vector<64x256xf32>, vector<32x256xf32> -> vector<32x256xf32>
    %c0_27 = arith.constant 0 : index
    %c0_28 = arith.constant 0 : index
    %50 = vector.load %arg5[%c0_27, %c0_28] : memref<32x1xf32, #tpu.memory_space<vmem>>, vector<32x1xf32>
    %51 = vector.broadcast %50 : vector<32x1xf32> to vector<32x256xf32>
    %52 = arith.addf %49, %51 : vector<32x256xf32>
    %c0_29 = arith.constant 0 : index
    %c0_30 = arith.constant 0 : index
    %53 = vector.load %arg6[%c0_29, %c0_30] : memref<32x256xf32, #tpu.memory_space<vmem>>, vector<32x256xf32>
    tpu.vector_store %arg6[%c0_29, %c0_30], %52 {strides = array<i32>} : memref<32x256xf32, #tpu.memory_space<vmem>>, vector<32x256xf32>,
    return
  }
  func.func @transform_0(%arg0: i32) -> (i32, i32) {
    %c0_i32 = arith.constant 0 : i32
    %c0_i32_0 = arith.constant 0 : i32
    %c0_i32_1 = arith.constant 0 : i32
    return %c0_i32, %c0_i32_0 : i32, i32
  }
  func.func @transform_1(%arg0: i32) -> (i32, i32) {
    %c0_i32 = arith.constant 0 : i32
    %c0_i32_0 = arith.constant 0 : i32
    %c0_i32_1 = arith.constant 0 : i32
    return %c0_i32, %c0_i32_0 : i32, i32
  }
  func.func @transform_2(%arg0: i32) -> (i32, i32) {
    %c0_i32 = arith.constant 0 : i32
    %c0_i32_0 = arith.constant 0 : i32
    %c0_i32_1 = arith.constant 0 : i32
    return %c0_i32, %c0_i32_0 : i32, i32
  }
  func.func @transform_3(%arg0: i32) -> (i32, i32) {
    %c0_i32 = arith.constant 0 : i32
    %c0_i32_0 = arith.constant 0 : i32
    %c0_i32_1 = arith.constant 0 : i32
    return %c0_i32, %c0_i32_0 : i32, i32
  }
  func.func @transform_4(%arg0: i32) -> (i32, i32) {
    %c0_i32 = arith.constant 0 : i32
    %c0_i32_0 = arith.constant 0 : i32
    %c0_i32_1 = arith.constant 0 : i32
    return %c0_i32, %c0_i32_0 : i32, i32
  }
  func.func @transform_5(%arg0: i32) -> (i32, i32) {
    %c0_i32 = arith.constant 0 : i32
    %c0_i32_0 = arith.constant 0 : i32
    %c0_i32_1 = arith.constant 0 : i32
    return %c0_i32, %c0_i32_0 : i32, i32
  }
}

</mosaic_0001>

<bundles_post_ra>
// kernel: tpu_custom_call.1
= control target key start
LH: loop header
LB: loop body
LE: loop exit
PB: predicated region body
PF: predicated region fallthrough
CT: control target
= control target key end

     0   :  { %10 = vsyncpa [#allocation5], 0  ;;  %s1015_s0 = inlined_call_operand.vmem [shape: f32[32,256], index: 0, kind: input, shape index: {}]   ;;  %s1016_s1 = inlined_call_operand.hbm [shape: f32[32,96], index: 1, kind: input, shape index: {}]   ;;  %s1017_s2 = inlined_call_operand.vmem [shape: f32[32,1], index: 2, kind: input, shape index: {}]   ;;  %s1018_s3 = inlined_call_operand.hbm [shape: f32[32,64], index: 3, kind: input, shape index: {}]   ;;  %s1019_s4 = inlined_call_operand.vmem [shape: f32[32,1], index: 4, kind: input, shape index: {}]   ;;  %s1020_s5 = inlined_call_operand.hbm [shape: f32[32,256], index: 5, kind: output, shape index: {}]  }
   0x1   :  { %11 = vsyncpa [#allocation8], 0 }
   0x2   :  { %12 = vsyncpa [#allocation6], 0  ;;  %s733_s18 = smov [#allocation4]   ;;  %s661_s22 = scalar_lea.hbm %s1016_s1, 512 }
   0x3   :  { %s20_s19 = sshll.u32 %s733_s18, 4  ;;  %p662_p0 = scmp.ne.s32.totalorder %s1016_s1, %s661_s22  ;;  %s21_s19 = int_to_ptr.vmem [resolvable:$true] %s20_s19 }
   0x4   :  { %p665_p1 = scmp.lt.u32.totalorder %s661_s22, %s1016_s1 }
   0x6   :  { %p667_p2 = pnand %p665_p1, %p662_p0 }
   0x8   :  { %670 = shalt.err (!%p667_p2)
}
   0x9   :  { %s671_s27 = scalar_lea.vmem %s21_s19, 512  ;;  %p676_p4 = scmp.lt.s32.totalorder %s21_s19, %s21_s19 }
   0xa   :  { %p672_p3 = scmp.ne.s32.totalorder %s21_s19, %s671_s27  ;;  %p677_p5 = scmp.lt.s32.totalorder %s671_s27, %s671_s27 }
   0xc   :  { %p678_p6 = por %p677_p5, %p676_p4 }
   0xe   :  { %p679_p7 = pnand %p678_p6, %p672_p3 }
  0x10   :  { %682 = shalt.err (!%p679_p7)
}
  0x11   :  { %s734_s28 = smov 128   ;;  %s735_s29 = smov 8  }
  0x12   :  { %26 = dma.hbm_to_vmem [thread:$0]  %s1016_s1, 512, %s21_s19, [#allocation5], %s734_s28, %s734_s28, %s735_s29  }
  0x13   :  { %s736_s7 = smov [#allocation7]   ;;  %s683_s11 = scalar_lea.hbm %s1018_s3, 512 }
  0x14   :  { %s34_s8 = sshll.u32 %s736_s7, 4  ;;  %p684_p8 = scmp.ne.s32.totalorder %s1018_s3, %s683_s11  ;;  %s35_s8 = int_to_ptr.vmem [resolvable:$true] %s34_s8 }
  0x15   :  { %p687_p9 = scmp.lt.u32.totalorder %s683_s11, %s1018_s3 }
  0x17   :  { %p689_p10 = pnand %p687_p9, %p684_p8 }
  0x19   :  { %692 = shalt.err (!%p689_p10)
}
  0x1a   :  { %s693_s16 = scalar_lea.vmem %s35_s8, 512  ;;  %p698_p12 = scmp.lt.s32.totalorder %s35_s8, %s35_s8 }
  0x1b   :  { %p694_p11 = scmp.ne.s32.totalorder %s35_s8, %s693_s16  ;;  %p699_p13 = scmp.lt.s32.totalorder %s693_s16, %s693_s16 }
  0x1d   :  { %p700_p0 = por %p699_p13, %p698_p12 }
  0x1f   :  { %p701_p1 = pnand %p700_p0, %p694_p11 }
  0x21   :  { %704 = shalt.err (!%p701_p1)
}
  0x22   :  { %40 = dma.hbm_to_vmem [thread:$0]  %s1018_s3, 512, %s35_s8, [#allocation8], %s734_s28, %s734_s28, %s735_s29  }
  0x23   :  { %727 = dma.done.wait [#allocation5], 512  }
  0x24   :  { %728 = vsyncadd [#allocation5], 4294966784 }
  0x25   :  { %729 = dma.done.wait [#allocation8], 512  }
  0x26   :  { %730 = vsyncadd [#allocation8], 4294966784  ;;  %v801_v0 = vld [vmem:[%s1015_s0] sm:$0xff]  ;;  %v806_v1 = vld [vmem:[%s1015_s0 + $0x10] sm:$0xff]  ;;  %s738_s8 = smov 1   ;;  %v739_v32 = vmov 0.0   ;;  %v89_v42 = vlaneseq }
  0x27   :  { %v811_v2 = vld [vmem:[%s1015_s0 + $0x8] sm:$0xff]  ;;  %v57_v3 = vmul.f32 0.2, %v801_v0  ;;  %v59_v4 = vmul.f32 0.2, %v806_v1  ;;  %v818_v5 = vld [vmem:[%s1015_s0 + $0x18] sm:$0xff]  ;;  %331 = vmatprep.mubr.f32.mxu0 %v739_v32  ;;  %509 = vmatprep.mubr.f32.mxu1 %v739_v32 }
  0x28   :  { %v823_v6 = vld [vmem:[%s1015_s0 + $0x28] sm:$0xff]  ;;  %v58_v7 = vmul.f32 0.2, %v811_v2  ;;  %v60_v8 = vmul.f32 0.2, %v818_v5  ;;  %v830_v9 = vld [vmem:[%s1015_s0 + $0x38] sm:$0xff] }
  0x29   :  { %v835_v10 = vld [vmem:[%s1015_s0 + $0x20] sm:$0xff]  ;;  %v838_v11 = vmax.f32 %v801_v0, %v57_v3  ;;  %v841_v12 = vmax.f32 %v806_v1, %v59_v4  ;;  %v62_v13 = vmul.f32 0.2, %v823_v6  ;;  %v64_v14 = vmul.f32 0.2, %v830_v9  ;;  %v848_v15 = vld [vmem:[%s1015_s0 + $0x30] sm:$0xff] }
  0x2a   :  { %v851_v16 = vmax.f32 %v811_v2, %v58_v7  ;;  %v854_v17 = vmax.f32 %v818_v5, %v60_v8  ;;  %v61_v18 = vmul.f32 0.2, %v835_v10  ;;  %v63_v19 = vmul.f32 0.2, %v848_v15  ;;  %s737_s0 = smov 127   ;;  %v231_v33 = vld [vmem:[%s1017_s2 + $0x8] sm:$0xff] }
  0x2b   :  { %v629_v20 = vpack.i.bf16 %v841_v12, %v838_v11  ;;  %v863_v22 = vmax.f32 %v823_v6, %v62_v13  ;;  %v866_v23 = vmax.f32 %v830_v9, %v64_v14  ;;  %v578_v29 = vpack.c.bf16 %v841_v12, %v838_v11  ;;  %v230_v34 = vld [vmem:[%s1017_s2] sm:$0xff]  ;;  %v232_v36 = vld [vmem:[%s1017_s2 + $0x10] sm:$0xff]  ;;  %v233_v37 = vld [vmem:[%s1017_s2 + $0x18] sm:$0xff]  ;;  %s741_s2 = smov [#allocation9]  }
  0x2c   :  { %v634_v21 = vpack.i.bf16 %v854_v17, %v851_v16  ;;  %v869_v24 = vmax.f32 %v835_v10, %v61_v18  ;;  %v872_v25 = vmax.f32 %v848_v15, %v63_v19  ;;  %v576_v28 = vpack.c.bf16 %v854_v17, %v851_v16  ;;  %v408_v38 = vld [vmem:[%s1019_s4] sm:$0xff]  ;;  %v409_v39 = vld [vmem:[%s1019_s4 + $0x8] sm:$0xff]  ;;  %v410_v40 = vld [vmem:[%s1019_s4 + $0x10] sm:$0xff] }
  0x2d   :  { %630 = vrot.lane.b32.xlu1 %v629_v20, %s737_s0  ;;  %620 = vrot.lane.b32.xlu0 %v629_v20, %s738_s8  ;;  %v644_v26 = vpack.i.bf16 %v866_v23, %v863_v22  ;;  %v580_v30 = vpack.c.bf16 %v866_v23, %v863_v22  ;;  %v740_v35 = vmov 0   ;;  %v411_v41 = vld [vmem:[%s1019_s4 + $0x18] sm:$0xff]  ;;  %v912_v43 = vand.u32 127, %v89_v42  ;;  %v202_v22 = vld [vmem:[#allocation4] sm:$0xff]  ;;  %v203_v23 = vld [vmem:[#allocation4 + $0x8] sm:$0xff]  ;;  %s547_s4 = sshll.u32 %s741_s2, 4  ;;  %s548_s4 = int_to_ptr.vmem [resolvable:$true] %s547_s4 }
  0x2e   :  { %v639_v27 = vpack.i.bf16 %v872_v25, %v869_v24  ;;  %v582_v31 = vpack.c.bf16 %v872_v25, %v869_v24  ;;  %660 = vset.pattern.permute.xlu1 %v740_v35  ;;  %659 = vset.pattern.permute.xlu0 %v740_v35  ;;  %vm254_vm6 = vcmask 785408   ;;  %v204_v24 = vld [vmem:[#allocation4 + $0x10] sm:$0xff]  ;;  %v205_v25 = vld [vmem:[#allocation4 + $0x18] sm:$0xff]  ;;  %vm432_vm7 = vcmask 523264   ;;  %s705_s3 = scalar_lea.vmem %s548_s4, 1024  ;;  %p710_p3 = scmp.lt.s32.totalorder %s548_s4, %s548_s4 }
  0x2f   :  { %v915_v44 = vadd.s32 128, %v912_v43  ;;  %vm91_vm0 = vcmp.lt.s32.totalorder %v912_v43, 1  ;;  %vm116_vm1 = vcmp.lt.s32.totalorder %v912_v43, 127  ;;  %v130_v49 = vand.u32 63, %v912_v43  ;;  %p706_p2 = scmp.ne.s32.totalorder %s548_s4, %s705_s3  ;;  %p711_p4 = scmp.lt.s32.totalorder %s705_s3, %s705_s3 }
  0x31   :  { %635 = vrot.lane.b32.xlu1 %v634_v21, %s737_s0  ;;  %625 = vrot.lane.b32.xlu0 %v634_v21, %s738_s8  ;;  %v137_v45 = vand.u32 63, %v915_v44  ;;  %vm939_vm3 = vcmp.eq.s32.totalorder %v130_v49, 0  ;;  %vm164_vm5 = vcmp.eq.s32.totalorder %v130_v49, 63  ;;  %p712_p5 = por %p711_p4, %p710_p3 }
  0x33   :  { %vm920_vm2 = vcmp.eq.s32.totalorder %v137_v45, 0  ;;  %vm165_vm4 = vcmp.eq.s32.totalorder %v137_v45, 63  ;;  %p713_p6 = pnand %p712_p5, %p706_p2 }
  0x35   :  { %645 = vrot.lane.b32.xlu1 %v644_v26, %s738_s8  ;;  %640 = vrot.lane.b32.xlu0 %v639_v27, %s738_s8 }
  0x39   :  { %655 = vrot.lane.b32.xlu1 %v644_v26, %s737_s0  ;;  %650 = vrot.lane.b32.xlu0 %v639_v27, %s737_s0 }
  0x3d   :  { %241 = vperm.xlu1 %660, %v231_v33   ;;  %236 = vperm.xlu0 %659, %v230_v34  }
  0x41   :  { %246 = vperm.xlu1 %660, %v232_v36   ;;  %251 = vperm.xlu0 %659, %v233_v37  }
  0x45   :  { %414 = vperm.xlu1 %660, %v408_v38   ;;  %419 = vperm.xlu0 %659, %v409_v39  }
  0x49   :  { %424 = vperm.xlu1 %660, %v410_v40   ;;  %429 = vperm.xlu0 %659, %v411_v41  }
  0x9f   :  { %v631_v46 = vpop.permute.xlu1 %630  ;;  %v621_v47 = vpop.permute.xlu0 %620 }
  0xa0   :  { %v633_v50 = vunpack.i.h.bf16 %v631_v46  ;;  %v632_v51 = vunpack.i.l.bf16 %v631_v46  ;;  %v623_v52 = vunpack.i.h.bf16 %v621_v47  ;;  %v622_v53 = vunpack.i.l.bf16 %v621_v47 }
  0xa3   :  { %v636_v54 = vpop.permute.xlu1 %635  ;;  %v626_v55 = vpop.permute.xlu0 %625 }
  0xa4   :  { %v638_v56 = vunpack.i.h.bf16 %v636_v54  ;;  %v637_v57 = vunpack.i.l.bf16 %v636_v54  ;;  %v628_v58 = vunpack.i.h.bf16 %v626_v55  ;;  %v627_v59 = vunpack.i.l.bf16 %v626_v55 }
  0xa6   :  { %v92_v60 = vsel %vm91_vm0, %v622_v53, %v627_v59  ;;  %v93_v61 = vsel %vm91_vm0, %v623_v52, %v628_v58  ;;  %v121_v62 = vsel %vm116_vm1, %v637_v57, %v632_v51  ;;  %v122_v63 = vsel %vm116_vm1, %v638_v56, %v633_v50 }
  0xa7   :  { %v646_v3 = vpop.permute.xlu1 %645  ;;  %v641_v4 = vpop.permute.xlu0 %640  ;;  %v157_v7 = vsel %vm920_vm2, %v121_v62, %v92_v60  ;;  %v159_v8 = vsel %vm920_vm2, %v122_v63, %v93_v61  ;;  %v96_v13 = vsel %vm91_vm0, %v627_v59, %v622_v53  ;;  %v97_v21 = vsel %vm91_vm0, %v628_v58, %v623_v52 }
  0xa8   :  { %v648_v18 = vunpack.i.h.bf16 %v646_v3  ;;  %v647_v19 = vunpack.i.l.bf16 %v646_v3  ;;  %v643_v20 = vunpack.i.h.bf16 %v641_v4  ;;  %v642_v26 = vunpack.i.l.bf16 %v641_v4 }
  0xa9   :  { %v568_v27 = vpack.c.bf16 %v159_v8, %v157_v7  ;;  %v117_v33 = vsel %vm116_vm1, %v632_v51, %v637_v57  ;;  %v118_v34 = vsel %vm116_vm1, %v633_v50, %v638_v56  ;;  %v171_v43 = vsel %vm165_vm4, %v92_v60, %v121_v62 }
  0xaa   :  { %v95_v35 = vsel %vm91_vm0, %v643_v20, %v648_v18  ;;  %v156_v38 = vsel %vm939_vm3, %v117_v33, %v96_v13  ;;  %v158_v39 = vsel %vm939_vm3, %v118_v34, %v97_v21  ;;  %v99_v46 = vsel %vm91_vm0, %v648_v18, %v643_v20 }
  0xab   :  { %569 = vmatprep.subr.bf16.mxu0 %v568_v27  ;;  %v656_v36 = vpop.permute.xlu1 %655  ;;  %v651_v37 = vpop.permute.xlu0 %650  ;;  %v94_v47 = vsel %vm91_vm0, %v642_v26, %v647_v19  ;;  %v98_v50 = vsel %vm91_vm0, %v647_v19, %v642_v26  ;;  %v570_v51 = vpack.c.bf16 %v158_v39, %v156_v38  ;;  %v173_v48 = vsel %vm165_vm4, %v93_v61, %v122_v63 }
  0xac   :  { %v658_v40 = vunpack.i.h.bf16 %v656_v36  ;;  %v657_v41 = vunpack.i.l.bf16 %v656_v36  ;;  %v653_v42 = vunpack.i.h.bf16 %v651_v37  ;;  %v652_v44 = vunpack.i.l.bf16 %v651_v37 }
  0xad   :  { %571 = vmatpush1.bf16.msra.mxu0 %v570_v51  ;;  %v584_v7 = vpack.c.bf16 %v173_v48, %v171_v43  ;;  %v170_v8 = vsel %vm164_vm5, %v96_v13, %v117_v33  ;;  %v172_v14 = vsel %vm164_vm5, %v97_v21, %v118_v34  ;;  %v600_v48 = vpack.c.bf16 %v818_v5, %v811_v2  ;;  %v389_v2 = vld [vmem:[#allocation7 + $0x8] sm:$0xff] }
  0xae   :  { %v120_v52 = vsel %vm116_vm1, %v653_v42, %v658_v40  ;;  %v124_v53 = vsel %vm116_vm1, %v658_v40, %v653_v42  ;;  %v119_v54 = vsel %vm116_vm1, %v652_v44, %v657_v41  ;;  %v123_v55 = vsel %vm116_vm1, %v657_v41, %v652_v44 }
  0xaf   :  { %v161_v56 = vsel %vm920_vm2, %v123_v55, %v94_v47  ;;  %v163_v57 = vsel %vm920_vm2, %v124_v53, %v95_v35  ;;  %v160_v58 = vsel %vm939_vm3, %v119_v54, %v98_v50  ;;  %v162_v59 = vsel %vm939_vm3, %v120_v52, %v99_v46 }
  0xb0   :  { %v572_v3 = vpack.c.bf16 %v163_v57, %v161_v56  ;;  %v574_v4 = vpack.c.bf16 %v162_v59, %v160_v58  ;;  %v175_v16 = vsel %vm165_vm4, %v94_v47, %v123_v55  ;;  %v177_v17 = vsel %vm165_vm4, %v95_v35, %v124_v53 }
  0xb1   :  { %v588_v11 = vpack.c.bf16 %v177_v17, %v175_v16  ;;  %v174_v12 = vsel %vm164_vm5, %v98_v50, %v119_v54  ;;  %v388_v16 = vld [vmem:[#allocation7] sm:$0xff] }
  0xb2   :  { %573 = vmatprep.subr.bf16.mxu0 %v572_v3 }
  0xb3   :  { %575 = vmatpush1.bf16.msra.mxu0 %v574_v4 }
  0xb4   :  { %577 = vmatprep.subr.bf16.mxu0 %v576_v28  ;;  %v586_v28 = vpack.c.bf16 %v172_v14, %v170_v8  ;;  %v604_v8 = vpack.c.bf16 %v830_v9, %v823_v6  ;;  %v606_v14 = vpack.c.bf16 %v848_v15, %v835_v10 }
  0xb7   :  { %579 = vmatpush1.bf16.msra.mxu0 %v578_v29  ;;  %v176_v29 = vsel %vm164_vm5, %v99_v46, %v120_v52 }
  0xb8   :  { %581 = vmatprep.subr.bf16.mxu0 %v580_v30  ;;  %v590_v45 = vpack.c.bf16 %v176_v29, %v174_v12 }
  0xbb   :  { %583 = vmatpush1.bf16.msra.mxu0 %v582_v31 }
  0xbc   :  { %585 = vmatprep.subr.bf16.mxu0 %v584_v7  ;;  %v237_v30 = vpop.permute.xlu0 %236  ;;  %v242_v61 = vpop.permute.xlu1 %241  ;;  %v602_v7 = vpack.c.bf16 %v806_v1, %v801_v0  ;;  %v390_v0 = vld [vmem:[#allocation7 + $0x10] sm:$0xff]  ;;  %v391_v1 = vld [vmem:[#allocation7 + $0x18] sm:$0xff] }
  0xbf   :  { %587 = vmatpush1.bf16.msra.mxu0 %v586_v28 }
  0xc0   :  { %589 = vmatprep.subr.bf16.mxu0 %v588_v11  ;;  %v247_v27 = vpop.permute.xlu1 %246  ;;  %v252_v44 = vpop.permute.xlu0 %251 }
  0xc3   :  { %591 = vmatpush1.bf16.msra.mxu0 %v590_v45 }
  0xc4   :  { %v415_v5 = vpop.permute.xlu1 %414  ;;  %v420_v17 = vpop.permute.xlu0 %419 }
  0xc6   :  { %560 = vmatmul.mubr.msk.f32.vlgmr.msra.gmra.mrb[0].mxu0 %vm254_vm6, %v202_v22 }
  0xc7   :  { %337 = vmatprep.mubr.f32.mxu0 %v739_v32 }
  0xc8   :  { %v425_v45 = vpop.permute.xlu1 %424 }
  0xca   :  { %561 = vmatmul.mubr.msk.f32.gmra.mrb[2].mxu0 %vm254_vm6, %v203_v23 }
  0xcb   :  { %343 = vmatprep.mubr.f32.mxu0 %v739_v32 }
  0xce   :  { %562 = vmatmul.mubr.msk.f32.gmra.mrb[4].mxu0 %vm254_vm6, %v204_v24 }
  0xcf   :  { %349 = vmatprep.mubr.f32.mxu0 %v739_v32 }
  0xd2   :  { %563 = vmatmul.mubr.msk.f32.gmra.mrb[6].mxu0 %vm254_vm6, %v205_v25  ;;  %v430_v25 = vpop.permute.xlu0 %429 }
 0x199   :  { %v333_v31 = vpop.f32.mrb[0].mxu0 }
 0x19a   :  { %v334_v49 = vadd.f32 %v333_v31, %v237_v30  ;;  %v335_v60 = vpop.f32.mrb[1].mxu0 }
 0x19b   :  { %v336_v62 = vadd.f32 %v335_v60, %v237_v30 }
 0x19c   :  { %v356_v13 = vmul.f32 0.2, %v334_v49 }
 0x19d   :  { %v339_v63 = vpop.f32.mrb[2].mxu0  ;;  %v357_v20 = vmul.f32 0.2, %v336_v62 }
 0x19e   :  { %v340_v18 = vadd.f32 %v339_v63, %v242_v61  ;;  %v341_v19 = vpop.f32.mrb[3].mxu0  ;;  %v364_v35 = vmax.f32 %v334_v49, %v356_v13 }
 0x19f   :  { %v342_v21 = vadd.f32 %v341_v19, %v242_v61  ;;  %v365_v40 = vmax.f32 %v336_v62, %v357_v20 }
 0x1a0   :  { %v358_v26 = vmul.f32 0.2, %v340_v18 }
 0x1a1   :  { %v359_v33 = vmul.f32 0.2, %v342_v21  ;;  %v345_v34 = vpop.f32.mrb[4].mxu0 }
 0x1a2   :  { %v366_v36 = vmax.f32 %v340_v18, %v358_v26  ;;  %v346_v37 = vadd.f32 %v345_v34, %v247_v27  ;;  %v347_v38 = vpop.f32.mrb[5].mxu0 }
 0x1a3   :  { %v348_v39 = vadd.f32 %v347_v38, %v247_v27  ;;  %v367_v41 = vmax.f32 %v342_v21, %v359_v33 }
 0x1a4   :  { %v594_v42 = vpack.c.bf16 %v366_v36, %v364_v35  ;;  %v360_v50 = vmul.f32 0.2, %v346_v37 }
 0x1a5   :  { %v351_v46 = vpop.f32.mrb[6].mxu0  ;;  %v592_v47 = vpack.c.bf16 %v367_v41, %v365_v40  ;;  %v361_v53 = vmul.f32 0.2, %v348_v39 }
 0x1a6   :  { %v352_v51 = vadd.f32 %v351_v46, %v252_v44  ;;  %v353_v52 = vpop.f32.mrb[7].mxu0  ;;  %v368_v57 = vmax.f32 %v346_v37, %v360_v50 }
 0x1a7   :  { %v354_v54 = vadd.f32 %v353_v52, %v252_v44  ;;  %593 = vmatprep.subr.bf16.mxu1 %v592_v47  ;;  %v369_v59 = vmax.f32 %v348_v39, %v361_v53 }
 0x1a8   :  { %v362_v55 = vmul.f32 0.2, %v352_v51  ;;  %595 = vmatpush1.bf16.msra.mxu1 %v594_v42 }
 0x1a9   :  { %v363_v56 = vmul.f32 0.2, %v354_v54 }
 0x1aa   :  { %v370_v58 = vmax.f32 %v352_v51, %v362_v55 }
 0x1ab   :  { %v371_v3 = vmax.f32 %v354_v54, %v363_v56 }
 0x1ac   :  { %v598_v4 = vpack.c.bf16 %v370_v58, %v368_v57 }
 0x1ad   :  { %v596_v43 = vpack.c.bf16 %v371_v3, %v369_v59 }
 0x1af   :  { %597 = vmatprep.subr.bf16.mxu1 %v596_v43 }
 0x1b0   :  { %599 = vmatpush1.bf16.msra.mxu1 %v598_v4 }
 0x1b1   :  { %601 = vmatprep.subr.bf16.mxu1 %v600_v48 }
 0x1b4   :  { %603 = vmatpush1.bf16.msra.mxu1 %v602_v7 }
 0x1b5   :  { %605 = vmatprep.subr.bf16.mxu1 %v604_v8 }
 0x1b8   :  { %607 = vmatpush1.bf16.msra.mxu1 %v606_v14 }
 0x1bb   :  { %564 = vmatmul.mubr.msk.f32.vlgmr.msra.gmra.mrb[0].mxu1 %vm432_vm7, %v388_v16 }
 0x1bc   :  { %515 = vmatprep.mubr.f32.mxu1 %v739_v32 }
 0x1bf   :  { %565 = vmatmul.mubr.msk.f32.gmra.mrb[2].mxu1 %vm432_vm7, %v389_v2 }
 0x1c0   :  { %521 = vmatprep.mubr.f32.mxu1 %v739_v32 }
 0x1c3   :  { %566 = vmatmul.mubr.msk.f32.gmra.mrb[4].mxu1 %vm432_vm7, %v390_v0 }
 0x1c4   :  { %527 = vmatprep.mubr.f32.mxu1 %v739_v32 }
 0x1c7   :  { %567 = vmatmul.mubr.msk.f32.gmra.mrb[6].mxu1 %vm432_vm7, %v391_v1 }
 0x28e   :  { %v511_v6 = vpop.f32.mrb[0].mxu1 }
 0x28f   :  { %v512_v9 = vadd.f32 %v511_v6, %v415_v5  ;;  %v513_v10 = vpop.f32.mrb[1].mxu1 }
 0x290   :  { %v514_v15 = vadd.f32 %v513_v10, %v415_v5 }
 0x291   :  { %534 = vst [vmem:[#allocation9] sm:$0xff] %v512_v9 }
 0x292   :  { %535 = vst [vmem:[#allocation9 + $0x8] sm:$0xff] %v514_v15  ;;  %v517_v28 = vpop.f32.mrb[2].mxu1 }
 0x293   :  { %v518_v11 = vadd.f32 %v517_v28, %v420_v17  ;;  %v519_v12 = vpop.f32.mrb[3].mxu1 }
 0x294   :  { %v520_v29 = vadd.f32 %v519_v12, %v420_v17 }
 0x295   :  { %536 = vst [vmem:[#allocation9 + $0x10] sm:$0xff] %v518_v11 }
 0x296   :  { %537 = vst [vmem:[#allocation9 + $0x18] sm:$0xff] %v520_v29  ;;  %v523_v22 = vpop.f32.mrb[4].mxu1 }
 0x297   :  { %v524_v23 = vadd.f32 %v523_v22, %v425_v45  ;;  %v525_v32 = vpop.f32.mrb[5].mxu1 }
 0x298   :  { %v526_v24 = vadd.f32 %v525_v32, %v425_v45 }
 0x299   :  { %538 = vst [vmem:[#allocation9 + $0x20] sm:$0xff] %v524_v23 }
 0x29a   :  { %539 = vst [vmem:[#allocation9 + $0x28] sm:$0xff] %v526_v24  ;;  %v529_v30 = vpop.f32.mrb[6].mxu1 }
 0x29b   :  { %v530_v31 = vadd.f32 %v529_v30, %v430_v25  ;;  %v531_v49 = vpop.f32.mrb[7].mxu1 }
 0x29c   :  { %v532_v60 = vadd.f32 %v531_v49, %v430_v25 }
 0x29d   :  { %540 = vst [vmem:[#allocation9 + $0x30] sm:$0xff] %v530_v31 }
 0x29e   :  { %541 = vst [vmem:[#allocation9 + $0x38] sm:$0xff] %v532_v60 }
 0x29f   :  { %716 = shalt.err (!%p713_p6)
}
 0x2a0   :  { %s717_s26 = scalar_lea.hbm %s1020_s5, 1024 }
 0x2a1   :  { %p718_p7 = scmp.ne.s32.totalorder %s1020_s5, %s717_s26  ;;  %p721_p8 = scmp.lt.u32.totalorder %s717_s26, %s1020_s5 }
 0x2a3   :  { %p723_p9 = pnand %p721_p8, %p718_p7 }
 0x2a5   :  { %726 = shalt.err (!%p723_p9)
}
 0x2a6   :  { %s742_s6 = smov 256   ;;  %s743_s7 = smov 16  }
 0x2a7   :  { %553 = dma.vmem_to_hbm [thread:$0]  %s548_s4, 1024, %s1020_s5, [#allocation6], %s742_s6, %s742_s6, %s743_s7  }
 0x2a8   :  { %731 = dma.done.wait [#allocation6], 1024  }
 0x2a9   :  { %732 = vsyncadd [#allocation6], 4294966272 }
 0x2aa   :  { %557 = vsyncpa [#allocation5], 1 }
 0x2ab   :  { %558 = vsyncpa [#allocation8], 1 }
 0x2ac   :  { %559 = vsyncpa [#allocation6], 1 }

</bundles_post_ra>
